<compile_context>
chip_gen: v6e
topology: v6e:2x2x1
jax: 0.10.0
libtpu: 0.0.40
codegen_flags: <defaults>
</compile_context>

<pallas_src>
import functools

import jax
import jax.numpy as jnp
from jax.experimental import pallas as pl
from jax.experimental.pallas import tpu as pltpu


def _pick_hw_tile(bytes_per_lane_double_buffered, hw,
                  budget_bytes=8 << 20, max_tile=2048):
    """Pick a lane-dense HW tile (multiple of 128) that keeps the
    double-buffered block under a conservative VMEM budget (fits the v5e
    16 MiB / v6e+v7x 32 MiB scoped defaults with headroom)."""
    if hw < 128:
        return hw  # single full block (legal: block dim == array dim)
    by_budget = max(128, (budget_bytes // max(bytes_per_lane_double_buffered, 1))
                    // 128 * 128)
    by_shape = (hw // 128) * 128
    return int(min(max_tile, by_shape, by_budget))


def _gap_conv_kernel(x_ref, w_ref, bias_ref, y_ref, acc_ref, *, hw, tile):
    # x_ref:    (N, Cin, tile)  input dtype (HW tile on the lane axis)
    # w_ref:    (Cin, Cout)     f32, BN scale already folded in
    # bias_ref: (1, Cout)       f32, folded BN bias
    # y_ref:    (N, Cout)       f32 pooled+conv+BN+ReLU result
    # acc_ref:  (N, Cin)        f32 running spatial sum (VMEM scratch)
    step = pl.program_id(0)

    @pl.when(step == 0)
    def _():
        acc_ref[...] = jnp.zeros_like(acc_ref)

    x = x_ref[...]  # stays in input dtype; accumulate in f32 without a
    #                 full-block f32 materialization.
    if hw % tile != 0:
        # Last tile is partial: exclude the padded lanes from the sum.
        pos = step * tile + jax.lax.broadcasted_iota(jnp.int32, x.shape, 2)
        x = jnp.where(pos < hw, x, jnp.zeros_like(x))
    acc_ref[...] += jnp.sum(x, axis=-1, dtype=jnp.float32)

    @pl.when(step == pl.num_programs(0) - 1)
    def _():
        gap = acc_ref[...] * jnp.float32(1.0 / hw)                    # (N, Cin)
        y = jnp.dot(gap, w_ref[...], preferred_element_type=jnp.float32)
        y_ref[...] = jnp.maximum(y + bias_ref[...], 0.0).astype(y_ref.dtype)


def _broadcast_kernel(y_ref, o_ref):
    # y_ref: (N, Cout) f32; o_ref: (N, Cout, tile) output dtype.
    # Bilinear upsample from 1x1 (align_corners=False) is a pure broadcast.
    y = y_ref[...]
    o_ref[...] = jnp.broadcast_to(y[:, :, None], o_ref.shape).astype(o_ref.dtype)


def aspp_pooling(x, conv_w, bn_gamma, bn_beta, bn_mean, bn_var, eps=1e-5):
    """x: (N, Cin, H, W) NCHW.  conv_w: (Cout, Cin, 1, 1) PyTorch layout."""
    N, Cin, H, W = x.shape
    Cout = conv_w.shape[0]
    HW = H * W

    # Fold BatchNorm (eval) into the 1x1 conv: scale -> weight, bias separate.
    scale = bn_gamma / jnp.sqrt(bn_var + eps)                          # (Cout,)
    w = jnp.transpose(conv_w.reshape(Cout, Cin), (1, 0))               # (Cin, Cout)
    w_scaled = (w * scale[None, :]).astype(jnp.float32)
    bias = (bn_beta - bn_mean * scale).reshape(1, Cout).astype(jnp.float32)

    x_flat = x.reshape(N, Cin, HW)

    # ---- Phase 1: tiled GAP accumulation + matmul + bias + ReLU -> (N, Cout)
    in_itemsize = jnp.dtype(x.dtype).itemsize
    tile_in = _pick_hw_tile(2 * N * Cin * in_itemsize, HW)
    grid_in = pl.cdiv(HW, tile_in)

    y = pl.pallas_call(
        functools.partial(_gap_conv_kernel, hw=HW, tile=tile_in),
        out_shape=jax.ShapeDtypeStruct((N, Cout), jnp.float32),
        grid=(grid_in,),
        in_specs=[
            pl.BlockSpec((N, Cin, tile_in), lambda i: (0, 0, i)),
            pl.BlockSpec((Cin, Cout), lambda i: (0, 0)),
            pl.BlockSpec((1, Cout), lambda i: (0, 0)),
        ],
        out_specs=pl.BlockSpec((N, Cout), lambda i: (0, 0)),
        scratch_shapes=[pltpu.VMEM((N, Cin), jnp.float32)],
        compiler_params=pltpu.CompilerParams(
            dimension_semantics=("arbitrary",)),
    )(x_flat, w_scaled, bias)

    # ---- Phase 2: lane-dense tiled broadcast to the full (N, Cout, HW) map.
    out_itemsize = jnp.dtype(x.dtype).itemsize
    tile_out = _pick_hw_tile(2 * N * Cout * out_itemsize, HW)
    grid_out = pl.cdiv(HW, tile_out)

    out_flat = pl.pallas_call(
        _broadcast_kernel,
        out_shape=jax.ShapeDtypeStruct((N, Cout, HW), x.dtype),
        grid=(grid_out,),
        in_specs=[pl.BlockSpec((N, Cout), lambda i: (0, 0))],
        out_specs=pl.BlockSpec((N, Cout, tile_out), lambda i: (0, 0, i)),
        compiler_params=pltpu.CompilerParams(
            dimension_semantics=("parallel",)),
    )(y)

    return out_flat.reshape(N, Cout, H, W)


if __name__ == "__main__":
    key = jax.random.PRNGKey(0)
    N, Cin, Cout, H, W = 2, 4, 8, 16, 16

    kx, kw, kg, kb, km, kv = jax.random.split(key, 6)
    x = jax.random.normal(kx, (N, Cin, H, W), dtype=jnp.float32)

    # Deterministic synthetic parameters (nn.Conv2d / nn.BatchNorm2d shapes).
    conv_w = jax.random.normal(kw, (Cout, Cin, 1, 1), dtype=jnp.float32) * 0.1
    bn_gamma = 1.0 + 0.1 * jax.random.normal(kg, (Cout,), dtype=jnp.float32)
    bn_beta = 0.1 * jax.random.normal(kb, (Cout,), dtype=jnp.float32)
    bn_mean = 0.05 * jax.random.normal(km, (Cout,), dtype=jnp.float32)
    bn_var = jnp.abs(1.0 + 0.1 * jax.random.normal(kv, (Cout,), dtype=jnp.float32))

    out = aspp_pooling(x, conv_w, bn_gamma, bn_beta, bn_mean, bn_var)
    jax.block_until_ready(out)

    # Pure-JAX reference.
    gap = jnp.mean(x, axis=(2, 3))                                      # (N, Cin)
    y_ref = gap @ jnp.transpose(conv_w.reshape(Cout, Cin), (1, 0))      # (N, Cout)
    scale = bn_gamma / jnp.sqrt(bn_var + 1e-5)
    y_ref = jnp.maximum(y_ref * scale + (bn_beta - bn_mean * scale), 0.0)
    ref = jnp.broadcast_to(y_ref[:, :, None, None], (N, Cout, H, W))
    assert jnp.allclose(out, ref, atol=1e-5, rtol=1e-5), "mismatch vs reference"

    print("KERNEL_OK")
</pallas_src>

<mosaic_0001>
module attributes {stable_mosaic.version = 11 : i64} {
  func.func @_gap_conv_kernel(%arg0: i32, %arg1: memref<2x4x256xf32, #tpu.memory_space<vmem>>, %arg2: memref<4x8xf32, #tpu.memory_space<vmem>>, %arg3: memref<1x8xf32, #tpu.memory_space<vmem>>, %arg4: memref<2x8xf32, #tpu.memory_space<vmem>>, %arg5: memref<2x4xf32, #tpu.memory_space<vmem>>) attributes {dimension_semantics = [#tpu.dimension_semantics<arbitrary>], iteration_bounds = array<i64: 1>, scalar_prefetch = 0 : i64, scratch_operands = 1 : i64, tpu.core_type = #tpu.core_type<tc>, window_params = [{transform_indices = @transform_0, window_bounds = array<i64: 2, 4, 256>}, {pipeline_mode = #tpu.pipeline_mode<synchronous>, transform_indices = @transform_1, window_bounds = array<i64: 4, 8>}, {pipeline_mode = #tpu.pipeline_mode<synchronous>, transform_indices = @transform_2, window_bounds = array<i64: 1, 8>}, {pipeline_mode = #tpu.pipeline_mode<synchronous>, transform_indices = @transform_3, window_bounds = array<i64: 2, 8>}]} {
    %c0_i32 = arith.constant 0 : i32
    %0 = arith.cmpi eq, %arg0, %c0_i32 : i32
    %1 = arith.extui %0 : i1 to i32
    %c0_i32_0 = arith.constant 0 : i32
    %2 = arith.cmpi ne, %1, %c0_i32_0 : i32
    scf.if %2 {
      %cst_9 = arith.constant 0.000000e+00 : f32
      %11 = vector.broadcast %cst_9 : f32 to vector<2x4xf32>
      %c0_10 = arith.constant 0 : index
      %c0_11 = arith.constant 0 : index
      %12 = vector.load %arg5[%c0_10, %c0_11] : memref<2x4xf32, #tpu.memory_space<vmem>>, vector<2x4xf32>
      tpu.vector_store %arg5[%c0_10, %c0_11], %11 {strides = array<i32>} : memref<2x4xf32, #tpu.memory_space<vmem>>, vector<2x4xf32>,
    } else {
    }
    %c0 = arith.constant 0 : index
    %c0_1 = arith.constant 0 : index
    %c0_2 = arith.constant 0 : index
    %3 = vector.load %arg1[%c0, %c0_1, %c0_2] : memref<2x4x256xf32, #tpu.memory_space<vmem>>, vector<2x4x256xf32>
    %c0_3 = arith.constant 0 : index
    %c0_4 = arith.constant 0 : index
    %4 = vector.load %arg5[%c0_3, %c0_4] : memref<2x4xf32, #tpu.memory_space<vmem>>, vector<2x4xf32>
    %cst = arith.constant dense<0.000000e+00> : vector<2x4xf32>
    %5 = vector.multi_reduction <add>, %3, %cst [2] : vector<2x4x256xf32> to vector<2x4xf32>
    %6 = arith.addf %4, %5 : vector<2x4xf32>
    %c0_5 = arith.constant 0 : index
    %c0_6 = arith.constant 0 : index
    %7 = vector.load %arg5[%c0_5, %c0_6] : memref<2x4xf32, #tpu.memory_space<vmem>>, vector<2x4xf32>
    tpu.vector_store %arg5[%c0_5, %c0_6], %6 {strides = array<i32>} : memref<2x4xf32, #tpu.memory_space<vmem>>, vector<2x4xf32>,
    %c0_i32_7 = arith.constant 0 : i32
    %8 = arith.cmpi eq, %arg0, %c0_i32_7 : i32
    %9 = arith.extui %8 : i1 to i32
    %c0_i32_8 = arith.constant 0 : i32
    %10 = arith.cmpi ne, %9, %c0_i32_8 : i32
    scf.if %10 {
      %c0_9 = arith.constant 0 : index
      %c0_10 = arith.constant 0 : index
      %11 = vector.load %arg5[%c0_9, %c0_10] : memref<2x4xf32, #tpu.memory_space<vmem>>, vector<2x4xf32>
      %cst_11 = arith.constant 3.906250e-03 : f32
      %12 = vector.broadcast %cst_11 : f32 to vector<2x4xf32>
      %13 = arith.mulf %11, %12 : vector<2x4xf32>
      %c0_12 = arith.constant 0 : index
      %c0_13 = arith.constant 0 : index
      %14 = vector.load %arg2[%c0_12, %c0_13] : memref<4x8xf32, #tpu.memory_space<vmem>>, vector<4x8xf32>
      %cst_14 = arith.constant dense<0.000000e+00> : vector<2x8xf32>
      %15 = tpu.matmul %13, %14, %cst_14 {dimension_numbers = #tpu.dot_dimension_numbers<[1], [0], [0], [1], [0, 0, 1, 1], [], []>} : vector<2x4xf32>, vector<4x8xf32>, vector<2x8xf32> -> vector<2x8xf32>
      %c0_15 = arith.constant 0 : index
      %c0_16 = arith.constant 0 : index
      %16 = vector.load %arg3[%c0_15, %c0_16] : memref<1x8xf32, #tpu.memory_space<vmem>>, vector<1x8xf32>
      %17 = vector.broadcast %16 : vector<1x8xf32> to vector<2x8xf32>
      %18 = arith.addf %15, %17 : vector<2x8xf32>
      %cst_17 = arith.constant 0.000000e+00 : f32
      %19 = vector.broadcast %cst_17 : f32 to vector<2x8xf32>
      %20 = arith.maximumf %18, %19 : vector<2x8xf32>
      %c0_18 = arith.constant 0 : index
      %c0_19 = arith.constant 0 : index
      %21 = vector.load %arg4[%c0_18, %c0_19] : memref<2x8xf32, #tpu.memory_space<vmem>>, vector<2x8xf32>
      tpu.vector_store %arg4[%c0_18, %c0_19], %20 {strides = array<i32>} : memref<2x8xf32, #tpu.memory_space<vmem>>, vector<2x8xf32>,
    } else {
    }
    return
  }
  func.func @transform_0(%arg0: i32) -> (i32, i32, i32) {
    %c0_i32 = arith.constant 0 : i32
    %c0_i32_0 = arith.constant 0 : i32
    %c0_i32_1 = arith.constant 0 : i32
    return %c0_i32, %c0_i32_0, %arg0 : i32, i32, i32
  }
  func.func @transform_1(%arg0: i32) -> (i32, i32) {
    %c0_i32 = arith.constant 0 : i32
    %c0_i32_0 = arith.constant 0 : i32
    %c0_i32_1 = arith.constant 0 : i32
    return %c0_i32, %c0_i32_0 : i32, i32
  }
  func.func @transform_2(%arg0: i32) -> (i32, i32) {
    %c0_i32 = arith.constant 0 : i32
    %c0_i32_0 = arith.constant 0 : i32
    %c0_i32_1 = arith.constant 0 : i32
    return %c0_i32, %c0_i32_0 : i32, i32
  }
  func.func @transform_3(%arg0: i32) -> (i32, i32) {
    %c0_i32 = arith.constant 0 : i32
    %c0_i32_0 = arith.constant 0 : i32
    %c0_i32_1 = arith.constant 0 : i32
    return %c0_i32, %c0_i32_0 : i32, i32
  }
}

</mosaic_0001>

<bundles_post_ra>
// kernel: tpu_custom_call.1
= control target key start
LH: loop header
LB: loop body
LE: loop exit
PB: predicated region body
PF: predicated region fallthrough
CT: control target
= control target key end

     0   :  { %8 = vsyncpa [#allocation4], 0  ;;  %s325_s0 = inlined_call_operand.hbm [shape: f32[2,4,256], index: 0, kind: input, shape index: {}]   ;;  %s326_s1 = inlined_call_operand.hbm [shape: f32[4,8], index: 1, kind: input, shape index: {}]   ;;  %s327_s2 = inlined_call_operand.vmem [shape: f32[1,8], index: 2, kind: input, shape index: {}]   ;;  %s328_s3 = inlined_call_operand.hbm [shape: f32[2,8], index: 3, kind: output, shape index: {}]  }
   0x1   :  { %9 = vsyncpa [#allocation7], 0 }
   0x2   :  { %10 = vsyncpa [#allocation5], 0  ;;  %s279_s12 = smov [#allocation3]  }
   0x3   :  { %s16_s13 = sshll.u32 %s279_s12, 4  ;;  %s17_s13 = int_to_ptr.vmem [resolvable:$true] %s16_s13 }
   0x4   :  { %s221_s14 = scalar_lea.vmem %s17_s13, 256  ;;  %p226_p1 = scmp.lt.s32.totalorder %s17_s13, %s17_s13 }
   0x5   :  { %p222_p0 = scmp.ne.s32.totalorder %s17_s13, %s221_s14  ;;  %p227_p2 = scmp.lt.s32.totalorder %s221_s14, %s221_s14 }
   0x7   :  { %p228_p3 = por %p227_p2, %p226_p1 }
   0x9   :  { %p229_p4 = pnand %p228_p3, %p222_p0 }
   0xb   :  { %232 = shalt.err (!%p229_p4)
}
   0xc   :  { %s280_s15 = smov 128   ;;  %s281_s16 = smov 8  }
   0xd   :  { %22 = dma.hbm_to_vmem [thread:$0]  %s325_s0, 256, %s17_s13, [#allocation4], %s280_s15, %s280_s15, %s281_s16  }
   0xe   :  { %s282_s19 = smov [#allocation6]  }
   0xf   :  { %s29_s20 = sshll.u32 %s282_s19, 4  ;;  %s30_s20 = int_to_ptr.vmem [resolvable:$true] %s29_s20 }
  0x10   :  { %s241_s21 = scalar_lea.vmem %s30_s20, 64  ;;  %p246_p6 = scmp.lt.s32.totalorder %s30_s20, %s30_s20 }
  0x11   :  { %p242_p5 = scmp.ne.s32.totalorder %s30_s20, %s241_s21  ;;  %p247_p7 = scmp.lt.s32.totalorder %s241_s21, %s241_s21 }
  0x13   :  { %p248_p8 = por %p247_p7, %p246_p6 }
  0x15   :  { %p249_p9 = pnand %p248_p8, %p242_p5 }
  0x17   :  { %252 = shalt.err (!%p249_p9)
}
  0x18   :  { %32 = dma.hbm_to_vmem [thread:$0]  %s326_s1, 64, %s30_s20, [#allocation7]  }
  0x19   :  { %273 = dma.done.wait [#allocation4], 256  }
  0x1a   :  { %274 = vsyncadd [#allocation4], 4294967040 }
  0x1b   :  { %275 = dma.done.wait [#allocation7], 64  }
  0x1c   :  { %276 = vsyncadd [#allocation7], 4294967232  ;;  %vm56_vm0 = vcmask 1043456   ;;  %v47_v0 = vld [vmem:[#allocation3] sm:$0xff]  ;;  %v48_v1 = vld [vmem:[#allocation3 + $0x8] sm:$0xff]  ;;  %vm45_vm1 = vcmask 25600   ;;  %v69_v12 = vlaneseq }
  0x1d   :  { %v52_v2 = vcombine.high %v47_v0, %v47_v0  ;;  %v57_v3 = vsel %vm56_vm0, %v47_v0, 0.0  ;;  %v53_v4 = vcombine.high %v48_v1, %v48_v1  ;;  %v62_v6 = vsel %vm56_vm0, %v48_v1, 0.0  ;;  %v90_v11 = vld [vmem:[#allocation6] sm:$0xf]  ;;  %v194_v25 = vld [vmem:[%s327_s2] ss:$0 sm:$0xff] }
  0x1e   :  { %v283_v10 = vmov 0.0   ;;  %vm284_vm2 = vmmov 0   ;;  %v70_v13 = vand.u32 127, %v69_v12  ;;  %v72_v14 = vshrl.u32 %v69_v12, 7  ;;  %s285_s24 = smov [#allocation8]  }
  0x1f   :  { %v58_v5 = vsel %vm56_vm0, %v52_v2, 0.0  ;;  %v63_v7 = vsel %vm56_vm0, %v53_v4, 0.0  ;;  %46 = vst.msk [vmem:[#allocation2] sm:$0x3] %vm45_vm1, %v283_v10  ;;  %199 = vmatprep.subr.mxu0 %v283_v10  ;;  %201 = vmatprep.mubr.msk.f32.mxu0 %vm284_vm2, %v283_v10  ;;  %vm79_vm3 = vcmask 1041409   ;;  %vm98_vm4 = vcmask 31744  }
  0x20   :  { %v59_v8 = vadd.f32 %v58_v5, %v57_v3  ;;  %v64_v9 = vadd.f32 %v63_v7, %v62_v6  ;;  %200 = vmatpush3.msk.msra.mxu0 %vm56_vm0, %v90_v11  ;;  %v73_v16 = vsub.s32 %v70_v13, %v72_v14  ;;  %s184_s25 = sshll.u32 %s285_s24, 4  ;;  %vm176_vm5 = vcmask 58368   ;;  %s185_s25 = int_to_ptr.vmem [resolvable:$true] %s184_s25 }
  0x21   :  { %s253_s26 = scalar_lea.vmem %s185_s25, 32  ;;  %p258_p11 = scmp.lt.s32.totalorder %s185_s25, %s185_s25 }
  0x22   :  { %60 = vadd.xlane.f32.xlu0 %v59_v8  ;;  %p254_p10 = scmp.ne.s32.totalorder %s185_s25, %s253_s26  ;;  %p259_p12 = scmp.lt.s32.totalorder %s253_s26, %s253_s26 }
  0x24   :  { %p260_p13 = por %p259_p12, %p258_p11 }
  0x26   :  { %65 = vadd.xlane.f32.xlu0 %v64_v9  ;;  %v49_v20 = vld [vmem:[#allocation2] sm:$0x3]  ;;  %p261_p0 = pnand %p260_p13, %p254_p10 }
  0xab   :  { %v61_v15 = vpop.xlane.xlu0 %60 }
  0xac   :  { %v74_v18 = vrot.slane %v61_v15, %v73_v16 }
  0xaf   :  { %v66_v17 = vpop.xlane.xlu0 %65 }
  0xb0   :  { %v78_v19 = vrot.slane %v66_v17, %v73_v16 }
  0xb2   :  { %v80_v21 = vsel %vm79_vm3, %v78_v19, %v74_v18 }
  0xb3   :  { %v82_v22 = vadd.f32 %v80_v21, %v49_v20 }
  0xb5   :  { %84 = vst.msk [vmem:[#allocation2] sm:$0x3] %vm45_vm1, %v82_v22 }
  0xbc   :  { %v88_v23 = vld [vmem:[#allocation2] sm:$0x3] }
  0xbd   :  { %v89_v24 = vmul.f32 0.00390625, %v88_v23 }
  0xbf   :  { %202 = vmatmul.mubr.msk.f32.vlgmr.msra.gmra.mxu0 %vm98_vm4, %v89_v24 }
 0x17f   :  { %v171_v26 = vpop.f32.mrf.mxu0 }
 0x180   :  { %v172_v27 = vadd.f32 %v194_v25, %v171_v26 }
 0x181   :  { %v203_v28 = vpop.f32.mrf.mxu0 }
 0x182   :  { %v175_v29 = vmax.f32 %v172_v27, 0.0 }
 0x184   :  { %177 = vst.msk [vmem:[#allocation8] sm:$0x3] %vm176_vm5, %v175_v29 }
 0x185   :  { %264 = shalt.err (!%p261_p0)
}
 0x186   :  { %187 = dma.vmem_to_hbm [thread:$0]  %s185_s25, 32, %s328_s3, [#allocation5]  }
 0x187   :  { %277 = dma.done.wait [#allocation5], 32  }
 0x188   :  { %278 = vsyncadd [#allocation5], 4294967264 }
 0x189   :  { %191 = vsyncpa [#allocation4], 1 }
 0x18a   :  { %192 = vsyncpa [#allocation7], 1 }
 0x18b   :  { %193 = vsyncpa [#allocation5], 1 }

</bundles_post_ra>
